<compile_context>
chip_gen: v7x
topology: tpu7x:2x2x1
jax: 0.10.0
libtpu: 0.0.40
codegen_flags: <defaults>
</compile_context>

<pallas_src>
import functools

import numpy as np
import jax
import jax.numpy as jnp
from jax.experimental import pallas as pl
from jax.experimental.pallas import tpu as pltpu


def _round_up(x, m):
    return ((x + m - 1) // m) * m


# -----------------------------------------------------------------------------
# Pallas kernel: one sample per grid step (span pooling + slot-name scoring)
# -----------------------------------------------------------------------------
def _slot_kernel(dom_ref, mask_ref, hidden_ref, emb_ref, out_ref):
    # dom_ref:    (bsz,)            int32, SMEM (scalar prefetch; used by index_maps)
    # mask_ref:   (1, S_pad, L)     bf16,  VMEM  span-assignment mask of sample b
    # hidden_ref: (1, L, D)         bf16,  VMEM  encoder hidden states of sample b
    # emb_ref:    (1, D, N_pad)     bf16,  VMEM  slot embs of sample b's domain
    # out_ref:    (1, S_pad, N_pad) f32,   VMEM  slot-name logits of sample b
    del dom_ref  # only consumed by the BlockSpec index_maps

    # span-sum pooling: (S_pad, L) @ (L, D) -> (S_pad, D), bf16 MXU, f32 acc
    feats = jnp.dot(mask_ref[0], hidden_ref[0],
                    preferred_element_type=jnp.float32)
    # slot-name scoring: (S_pad, D) @ (D, N_pad) -> (S_pad, N_pad)
    out_ref[0] = jnp.dot(feats.astype(jnp.bfloat16), emb_ref[0],
                         preferred_element_type=jnp.float32)


# -----------------------------------------------------------------------------
# Model-init-time weight preparation (constant slot-embedding table)
# -----------------------------------------------------------------------------
def prepare_slot_emb_table(slot_emb_table):
    """slot_emb_table: (n_domains, D, N) f32, already transposed like
    `torch.FloatTensor(slot_embs[domain]).transpose(0, 1)`.
    Pads the slot axis to a lane-dense multiple of 128 and casts to bf16.
    Done once at model init — this is a constant weight."""
    n_domains, D, N = slot_emb_table.shape
    N_pad = _round_up(N, 128)
    emb_p = jnp.pad(slot_emb_table, ((0, 0), (0, 0), (0, N_pad - N)))
    return emb_p.astype(jnp.bfloat16)


# -----------------------------------------------------------------------------
# Jitted forward wrapper
# -----------------------------------------------------------------------------
@functools.partial(jax.jit, static_argnames=("n_slots",))
def slotname_predictor_pallas(domains, hidden_layers, span_masks, emb_padded,
                              *, n_slots):
    """
    domains:       (bsz,) int32                 domain id per sample
    hidden_layers: (bsz, L, D) float32          encoder hidden states
    span_masks:    (bsz, S_max, L) float32      span-assignment masks (host-built)
    emb_padded:    (n_domains, D, N_pad) bf16   from prepare_slot_emb_table()
    n_slots:       true N (static)
    returns:       (bsz, S_max, N) float32      slot-name logits (padded spans = 0)
    """
    bsz, L, D = hidden_layers.shape
    S_max = span_masks.shape[1]
    n_domains, _, N_pad = emb_padded.shape

    # bf16 sublane packing granularity for the MXU M dimension
    S_pad = _round_up(S_max, 16)

    # Guard out-of-range domain ids (reference would index-error; we clamp).
    doms = jnp.clip(domains.astype(jnp.int32), 0, n_domains - 1)

    # bf16 at the HBM boundary: 0/1 mask is exact in bf16; hidden is an
    # acceptable approximation (f32 accumulation inside the kernel).
    mask_p = jnp.pad(span_masks,
                     ((0, 0), (0, S_pad - S_max), (0, 0))).astype(jnp.bfloat16)
    hidden_b = hidden_layers.astype(jnp.bfloat16)

    flops = 2 * bsz * (S_pad * L * D + S_pad * D * N_pad)
    bytes_accessed = (mask_p.size * 2 + hidden_b.size * 2
                      + bsz * D * N_pad * 2          # one domain slab per sample
                      + bsz * S_pad * N_pad * 4)     # f32 output

    out = pl.pallas_call(
        _slot_kernel,
        out_shape=jax.ShapeDtypeStruct((bsz, S_pad, N_pad), jnp.float32),
        grid_spec=pltpu.PrefetchScalarGridSpec(
            num_scalar_prefetch=1,          # domains -> SMEM, visible to index_maps
            grid=(bsz,),
            in_specs=[
                pl.BlockSpec((1, S_pad, L), lambda b, dom: (b, 0, 0)),
                pl.BlockSpec((1, L, D),     lambda b, dom: (b, 0, 0)),
                # domain-selected slot-embedding slab, DMA'd by the pipeline
                pl.BlockSpec((1, D, N_pad), lambda b, dom: (dom[b], 0, 0)),
            ],
            out_specs=pl.BlockSpec((1, S_pad, N_pad), lambda b, dom: (b, 0, 0)),
        ),
        compiler_params=pltpu.CompilerParams(
            # batch axis is independent -> shard across TensorCores on v7x
            dimension_semantics=("parallel",),
            vmem_limit_bytes=32 * 1024 * 1024,
        ),
        cost_estimate=pl.CostEstimate(flops=flops, transcendentals=0,
                                      bytes_accessed=bytes_accessed),
    )(doms, mask_p, hidden_b, emb_padded)

    # strip span / slot padding (lane-dense kernel output, N_pad multiple of 128)
    return out[:, :S_max, :n_slots]


# -----------------------------------------------------------------------------
# Host glue: reproduce the B/I span-extraction logic as a mask
# -----------------------------------------------------------------------------
def build_span_masks(bin_labels, max_spans):
    """bin_labels: (bsz, L) int, 0=O 1=B 2=I  ->  (bsz, S_max, L) mask, (bsz,) counts."""
    bsz, L = bin_labels.shape
    masks = np.zeros((bsz, max_spans, L), np.float32)
    num_spans = np.zeros((bsz,), np.int32)
    for i in range(bsz):
        lab = bin_labels[i]
        b_pos = np.nonzero(lab == 1)[0]
        n = len(b_pos)
        num_spans[i] = n
        for j in range(n):
            start = int(b_pos[j])
            end = int(b_pos[j + 1]) if j + 1 < n else L
            masks[i, j, start] = 1.0               # the B token itself
            for t in range(start, end):            # trailing I tokens
                if lab[t] == 2:
                    masks[i, j, t] = 1.0
    return masks, num_spans


# -----------------------------------------------------------------------------
# Main
# -----------------------------------------------------------------------------
if __name__ == "__main__":
    # small, module-consistent shapes
    bsz = 2
    seq_len = 16
    hidden_dim = 16              # params.hidden_dim
    input_dim = hidden_dim * 2   # bidirectional -> 32
    n_domains = 3
    n_slots = 8                  # slots per domain (uniform synthetic table)
    S_max = 8                    # max number of spans per sample

    key = jax.random.PRNGKey(0)
    k_h, k_e = jax.random.split(key)

    slot_emb_table = jax.random.normal(
        k_e, (n_domains, input_dim, n_slots), dtype=jnp.float32)
    hidden_layers = jax.random.normal(
        k_h, (bsz, seq_len, input_dim), dtype=jnp.float32)
    domains = jnp.array([0, 2], dtype=jnp.int32)
    # binary (B/I/O) predictions, deterministic pattern: 0=O, 1=B, 2=I
    binary_predictions = np.array(
        [[0, 1, 2, 2, 0, 1, 0, 2, 0, 0, 1, 2, 0, 0, 0, 0],
         [1, 2, 0, 0, 0, 0, 0, 0, 0, 1, 2, 2, 2, 0, 1, 2]], dtype=np.int32)

    span_masks_np, num_spans = build_span_masks(binary_predictions, S_max)
    span_masks = jnp.asarray(span_masks_np)

    # one-time weight prep (model init), then jitted forward
    emb_padded = prepare_slot_emb_table(slot_emb_table)

    logits = slotname_predictor_pallas(domains, hidden_layers, span_masks,
                                       emb_padded, n_slots=n_slots)
    logits = jax.block_until_ready(logits)
    logits_np = np.asarray(logits)

    # ---- reference checks ---------------------------------------------------
    # (a) XLA reference mimicking the kernel's bf16-input / f32-accumulate math
    def _reference_bf16(doms, hidden, masks, emb_table):
        m = masks.astype(jnp.bfloat16)
        h = hidden.astype(jnp.bfloat16)
        e = emb_table.astype(jnp.bfloat16)
        feats = jnp.einsum("bst,btd->bsd", m, h,
                           preferred_element_type=jnp.float32)
        e_sel = e[doms]                                  # (bsz, D, N)
        return jnp.einsum("bsd,bdn->bsn", feats.astype(jnp.bfloat16), e_sel,
                          preferred_element_type=jnp.float32)

    ref_bf16 = np.asarray(jax.block_until_ready(
        _reference_bf16(domains, hidden_layers, span_masks, slot_emb_table)))
    assert np.allclose(logits_np, ref_bf16, rtol=1e-2, atol=1e-2)

    # (b) full-precision numpy reference (looser tolerance: bf16 MXU inputs)
    feats_f32 = np.einsum("bst,btd->bsd", span_masks_np, np.asarray(hidden_layers))
    ref_f32 = np.einsum("bsd,bdn->bsn", feats_f32,
                        np.asarray(slot_emb_table)[np.asarray(domains)])
    assert np.allclose(logits_np, ref_f32, rtol=5e-2, atol=2e-1)

    # reproduce the module's list-of-tensors output (None if sample has no spans)
    pred_slotname_list = []
    for i in range(bsz):
        n = int(num_spans[i])
        pred_slotname_list.append(None if n == 0 else logits_np[i, :n])

    print("KERNEL_OK")
</pallas_src>

<mosaic_0001>
module attributes {stable_mosaic.version = 11 : i64} {
  func.func @_slot_kernel(%arg0: i32, %arg1: memref<2xi32, #tpu.memory_space<smem>>, %arg2: memref<1x16x16xbf16, #tpu.memory_space<vmem>>, %arg3: memref<1x16x32xbf16, #tpu.memory_space<vmem>>, %arg4: memref<1x32x128xbf16, #tpu.memory_space<vmem>>, %arg5: memref<1x16x128xf32, #tpu.memory_space<vmem>>) attributes {dimension_semantics = [#tpu.dimension_semantics<parallel>], iteration_bounds = array<i64: 2>, scalar_prefetch = 1 : i64, scratch_operands = 0 : i64, tpu.core_type = #tpu.core_type<tc>, window_params = [{transform_indices = @transform_0, window_bounds = array<i64: 1, 16, 16>}, {transform_indices = @transform_1, window_bounds = array<i64: 1, 16, 32>}, {transform_indices = @transform_2, window_bounds = array<i64: 1, 32, 128>}, {transform_indices = @transform_3, window_bounds = array<i64: 1, 16, 128>}]} {
    %c0 = arith.constant 0 : index
    %c0_0 = arith.constant 0 : index
    %c0_1 = arith.constant 0 : index
    %0 = vector.load %arg2[%c0, %c0_0, %c0_1] : memref<1x16x16xbf16, #tpu.memory_space<vmem>>, vector<1x16x16xbf16>
    %1 = vector.shape_cast %0 : vector<1x16x16xbf16> to vector<16x16xbf16>
    %c0_2 = arith.constant 0 : index
    %c0_3 = arith.constant 0 : index
    %c0_4 = arith.constant 0 : index
    %2 = vector.load %arg3[%c0_2, %c0_3, %c0_4] : memref<1x16x32xbf16, #tpu.memory_space<vmem>>, vector<1x16x32xbf16>
    %3 = vector.shape_cast %2 : vector<1x16x32xbf16> to vector<16x32xbf16>
    %cst = arith.constant dense<0.000000e+00> : vector<16x32xf32>
    %4 = tpu.matmul %1, %3, %cst {dimension_numbers = #tpu.dot_dimension_numbers<[1], [0], [0], [1], [0, 0, 1, 1], [], []>} : vector<16x16xbf16>, vector<16x32xbf16>, vector<16x32xf32> -> vector<16x32xf32>
    %5 = arith.truncf %4 : vector<16x32xf32> to vector<16x32xbf16>
    %c0_5 = arith.constant 0 : index
    %c0_6 = arith.constant 0 : index
    %c0_7 = arith.constant 0 : index
    %6 = vector.load %arg4[%c0_5, %c0_6, %c0_7] : memref<1x32x128xbf16, #tpu.memory_space<vmem>>, vector<1x32x128xbf16>
    %7 = vector.shape_cast %6 : vector<1x32x128xbf16> to vector<32x128xbf16>
    %cst_8 = arith.constant dense<0.000000e+00> : vector<16x128xf32>
    %8 = tpu.matmul %5, %7, %cst_8 {dimension_numbers = #tpu.dot_dimension_numbers<[1], [0], [0], [1], [0, 0, 1, 1], [], []>} : vector<16x32xbf16>, vector<32x128xbf16>, vector<16x128xf32> -> vector<16x128xf32>
    %c0_9 = arith.constant 0 : index
    %c0_10 = arith.constant 0 : index
    %c0_11 = arith.constant 0 : index
    %9 = vector.load %arg5[%c0_9, %c0_10, %c0_11] : memref<1x16x128xf32, #tpu.memory_space<vmem>>, vector<1x16x128xf32>
    %10 = vector.shape_cast %9 : vector<1x16x128xf32> to vector<16x128xf32>
    %11 = vector.shape_cast %8 : vector<16x128xf32> to vector<1x16x128xf32>
    tpu.vector_store %arg5[%c0_9, %c0_10, %c0_11], %11 {strides = array<i32>} : memref<1x16x128xf32, #tpu.memory_space<vmem>>, vector<1x16x128xf32>,
    return
  }
  func.func @transform_0(%arg0: i32, %arg1: memref<2xi32, #tpu.memory_space<smem>>) -> (i32, i32, i32) {
    %c0_i32 = arith.constant 0 : i32
    %c0_i32_0 = arith.constant 0 : i32
    %c0_i32_1 = arith.constant 0 : i32
    return %arg0, %c0_i32, %c0_i32_0 : i32, i32, i32
  }
  func.func @transform_1(%arg0: i32, %arg1: memref<2xi32, #tpu.memory_space<smem>>) -> (i32, i32, i32) {
    %c0_i32 = arith.constant 0 : i32
    %c0_i32_0 = arith.constant 0 : i32
    %c0_i32_1 = arith.constant 0 : i32
    return %arg0, %c0_i32, %c0_i32_0 : i32, i32, i32
  }
  func.func @transform_2(%arg0: i32, %arg1: memref<2xi32, #tpu.memory_space<smem>>) -> (i32, i32, i32) {
    %0 = arith.index_cast %arg0 : i32 to index
    %1 = memref.load %arg1[%0] : memref<2xi32, #tpu.memory_space<smem>>
    %c0_i32 = arith.constant 0 : i32
    %c0_i32_0 = arith.constant 0 : i32
    %c0_i32_1 = arith.constant 0 : i32
    return %1, %c0_i32, %c0_i32_0 : i32, i32, i32
  }
  func.func @transform_3(%arg0: i32, %arg1: memref<2xi32, #tpu.memory_space<smem>>) -> (i32, i32, i32) {
    %c0_i32 = arith.constant 0 : i32
    %c0_i32_0 = arith.constant 0 : i32
    %c0_i32_1 = arith.constant 0 : i32
    return %arg0, %c0_i32, %c0_i32_0 : i32, i32, i32
  }
}

</mosaic_0001>

<bundles_post_ra>
// kernel: slotname_predictor_pallas.1
= control target key start
LH: loop header
LB: loop body
LE: loop exit
PB: predicated region body
PF: predicated region fallthrough
CT: control target
= control target key end

     0   :  { %s568_s0 = inlined_call_operand.vmem [shape: s32[2], index: 0, kind: input, shape index: {}]   ;;  %s569_s1 = inlined_call_operand.vmem [shape: bf16[2,16,16], index: 1, kind: input, shape index: {}]   ;;  %s570_s2 = inlined_call_operand.vmem [shape: bf16[2,16,32], index: 2, kind: input, shape index: {}]   ;;  %s571_s3 = inlined_call_operand.vmem [shape: bf16[3,32,128], index: 3, kind: input, shape index: {}]   ;;  %s572_s4 = inlined_call_operand.vmem [shape: f32[2,16,128], index: 4, kind: output, shape index: {}]  }
   0x1   :  { %s9_s17 = sshll.u32 %s568_s0, 4  ;;  %s10_s17 = int_to_ptr.vmem [resolvable:$true] %s9_s17 }
   0x2   :  { %s488_s18 = scalar_lea.vmem %s10_s17, 16  ;;  %p493_p1 = scmp.lt.s32.totalorder %s10_s17, %s10_s17 }
   0x3   :  { %p489_p0 = scmp.ne.s32.totalorder %s10_s17, %s488_s18  ;;  %p494_p2 = scmp.lt.s32.totalorder %s488_s18, %s488_s18 }
   0x5   :  { %p495_p3 = por %p494_p2, %p493_p1 }
   0x7   :  { %p496_p4 = pnand %p495_p3, %p489_p0 }
   0x9   :  { %499 = shalt.err (!%p496_p4)  }
   0xa   :  { %s510_s19 = smov [#allocation3]  }
   0xb   :  { %12 = dma.vmem_to_smem %s10_s17, 16, %s510_s19, [#allocation2] }
   0xc   :  { %504 = dma.done.wait [#allocation2], 16 }
   0xd   :  { %505 = vsyncadd [#allocation2], 4294967280 }
   0xe   :  { %14 = sfence }
   0xf   :  { %s541_s20 = smov 0  }
  0x10 LB: > { %s429_s0 = sadd.s32 4294967295, %s508_s20   ;;  %p433_p5 = scmp.ge.s32.totalorder %s508_s20, 1  ;;  %s508_s20 = sphi %s541_s20, %s20_s20  }
  0x11   : > { %p168_p6 = scmp.lt.s32.totalorder %s508_s20, 3 }
  0x13   : > { %p169_p7 = pnand %p433_p5, %p168_p6 }
  0x14   : > { %p203_p8 = scmp.lt.s32.totalorder (!%p169_p7), %s429_s0, 1  ;;  %s213_s21 = sld [smem:[#allocation3 + %s429_s0]] (!%p169_p7)  ;;  %v511_v0 = vmov (!%p169_p7), 0.0   ;;  %vm512_vm0 = vmmov (!%p169_p7), 0   ;;  %vm241_vm1 = vcmask (!%p169_p7), 130048   ;;  %vm303_vm2 = vcmask (!%p169_p7), 261120  }
  0x15   : > { %172 = sbr.rel (%p169_p7) target bundleno = 466 (0x1d2), region = 32  ;;  %459 = vmatprep.subr.bf16.mxu0 (!%p169_p7), %v511_v0  ;;  %461 = vmatprep.mubr.msk.bf16.mxu0 (!%p169_p7), %vm512_vm0, %v511_v0 }
  0x16   : > { %465 = vmatprep.subr.bf16.mxu1 (!%p169_p7), %v511_v0  ;;  %469 = vmatprep.mubr.msk.bf16.mxu1 (!%p169_p7), %vm512_vm0, %v511_v0 }
  0x1a   : > { %p214_p9 = scmp.lt.s32.totalorder (!%p169_p7), %s213_s21, 2 }
  0x1c   : > { %s574_s0 = smov (!%p203_p8, %s429_s0), 1  ;;  %s576_s21 = smov (!%p214_p9, %s213_s21), 2 }
  0x1d   : > { %s450_s22 = sshll.u32 %s574_s0, 3  ;;  %s452_s29 = sshll.u32 %s576_s21, 4 }
  0x1e   : > { %s207_s25 = scalar_lea.vmem %s569_s1, %s450_s22  ;;  %s212_s28 = scalar_lea.vmem %s570_s2, %s450_s22 }
  0x1f   : > { %v484_v1 = vld [vmem:[%s212_s28] sm:$0xff]   ;;  %s218_s6 = scalar_lea.vmem %s571_s3, %s452_s29  ;;  %s453_s7 = sshll.u32 %s574_s0, 4 }
  0x20   : > { %v485_v2 = vld [vmem:[%s207_s25] sm:$0xff]   ;;  %460 = vmatpush3.bf16.msra.mxu0 %v484_v1  ;;  %v487_v4 = vld [vmem:[%s218_s6 + $0x8] sm:$0xff]   ;;  %s224_s10 = scalar_lea.vmem %s572_s4, %s453_s7 }
  0x21   : > { %v486_v3 = vld [vmem:[%s218_s6] sm:$0xff]  }
  0x22   : > { %466 = vmatpush3.bf16.msra.mxu1 %v486_v3 }
  0x23   : > { %462 = vmatmul.mubr.msk.bf16.vlgmr.msra.gmra.mrb[0].mxu0 %vm241_vm1, %v485_v2  ;;  %467 = vmatprep.subr.bf16.mxu1 %v511_v0 }
  0x26   : > { %468 = vmatpush3.bf16.msra.mxu1 %v487_v4 }
  0xf6   : > { %v279_v5 = vpop.f32.mrb[0].mxu0 }
  0xf7   : > { %v463_v6 = vpop.f32.mrb[1].mxu0 }
  0xf8   : > { %v282_v7 = vpop.f32.mrb[2].mxu0 }
  0xf9   : > { %v286_v8 = vpack.c.bf16 %v282_v7, %v279_v5  ;;  %v464_v9 = vpop.f32.mrb[3].mxu0 }
  0xfb   : > { %470 = vmatmul.mubr.msk.bf16.vlgmr.msra.gmra.mrb[0].mxu1 %vm303_vm2, %v286_v8 }
 0x1ce   : > { %v341_v10 = vpop.f32.mrb[0].mxu1 }
 0x1cf   : > { %348 = vst [vmem:[%s224_s10] sm:$0xff] %v341_v10  ;;  %v471_v11 = vpop.f32.mrb[1].mxu1 }
 0x1d0   : > { %v344_v12 = vpop.f32.mrb[2].mxu1 }
 0x1d1   : > { %349 = vst [vmem:[%s224_s10 + $0x8] sm:$0xff] %v344_v12  ;;  %v472_v13 = vpop.f32.mrb[3].mxu1 }
 0x1d2 PF: > { %s20_s20 = sadd.s32 1, %s508_s20  }
 0x1d3   : > { %p17_p10 = scmp.ge.s32.totalorder %s20_s20, 4  }
 0x1d5   :  { %19 = sbr.rel (!%p17_p10) target bundleno = 16 (0x10), region = 68 }

</bundles_post_ra>
